<compile_context>
chip_gen: v6e
topology: v6e:2x2x1
jax: 0.10.0
libtpu: 0.0.40
codegen_flags: <defaults>
</compile_context>

<pallas_src>
import jax
import jax.numpy as jnp
from jax.experimental import pallas as pl
from jax.experimental.pallas import tpu as pltpu


def autoenc_kernel(x_ref, w1_ref, b1_ref, w2_ref, b2_ref, w3_ref, b3_ref, o_ref):
    dt = w1_ref.dtype  # matmul-input dtype: bf16 in low-precision mode, else f32

    def mm(w_ref, h):
        # (out, in) @ (in, tb) -> (out, tb); f32 accumulation on the MXU.
        return jnp.dot(w_ref[...], h.astype(dt), preferred_element_type=jnp.float32)

    x = x_ref[...]                                               # (9, tb)
    h1 = jnp.maximum(mm(w1_ref, x) + b1_ref[...], 0.0)           # (5, tb) f32
    h2 = jnp.maximum(mm(w2_ref, h1) + b2_ref[...], 0.0)          # (5, tb) f32
    o_ref[...] = (mm(w3_ref, h2) + b3_ref[...]).astype(o_ref.dtype)  # (6, tb)


def _round_up(n, m):
    return (n + m - 1) // m * m


def _tpu_kind():
    try:
        return jax.devices()[0].device_kind.lower()
    except Exception:
        return ""


def _default_block_b(kind):
    # Step-overhead amortization threshold scales with per-core HBM bandwidth.
    if "v7" in kind or "7x" in kind:
        return 65536      # ~3.2 TB/s per TC -> needs the largest tiles
    if "v6" in kind:
        return 32768      # ~1.3-1.4 TB/s
    if "v5" in kind:
        return 16384      # ~0.8 TB/s, 16 MiB default scoped VMEM
    return 32768


def autoenc_forward_fm(x_t, params, *, block_b=None, use_bf16=True, out_dtype=None):
    """Feature-major entry point: x_t (9, B) -> (6, B). Zero wrapper layout passes."""
    f_in, B = x_t.shape
    assert f_in == 9, x_t.shape
    out_dtype = x_t.dtype if out_dtype is None else out_dtype

    kind = _tpu_kind()
    if block_b is None:
        block_b = _default_block_b(kind)
    multi_core = ("v7" in kind) or ("7x" in kind)
    min_steps = 8 if multi_core else 1           # keep both v7x TensorCores fed
    tb = min(_round_up(block_b, 128), _round_up(-(-B // min_steps), 128))
    tb = max(tb, 128)
    grid = (pl.cdiv(B, tb),)                     # ragged last block is clipped

    w1, w2, w3 = params["w1"], params["w2"], params["w3"]        # PyTorch (out, in)
    if use_bf16:
        # Pre-cast resident weights once (no per-step VPU casts in the kernel).
        w1, w2, w3 = (w.astype(jnp.bfloat16) for w in (w1, w2, w3))
    b1 = params["b1"].reshape(-1, 1).astype(jnp.float32)         # (out, 1) lane bcast
    b2 = params["b2"].reshape(-1, 1).astype(jnp.float32)
    b3 = params["b3"].reshape(-1, 1).astype(jnp.float32)

    def resident(a):
        # Whole array as one block, same block every step -> stays in VMEM.
        return pl.BlockSpec(a.shape, lambda i, _nd=a.ndim: (0,) * _nd)

    # Explicit VMEM budget: x block pads 9 -> 16 sublanes, out 6 -> 8 sublanes,
    # both double-buffered; plus in-kernel f32/bf16 temporaries and headroom.
    x_bytes = 16 * tb * x_t.dtype.itemsize
    out_bytes = 8 * tb * jnp.dtype(out_dtype).itemsize
    temps_bytes = 160 * tb
    footprint = 2 * (x_bytes + out_bytes) + temps_bytes + (1 << 20)
    vmem_cap = (48 << 20) if multi_core else (100 << 20)   # v7x: 64 MiB physical
    vmem_limit = int(min(vmem_cap, max(32 << 20, footprint)))

    return pl.pallas_call(
        autoenc_kernel,
        out_shape=jax.ShapeDtypeStruct((6, B), out_dtype),
        grid=grid,
        in_specs=[
            pl.BlockSpec((9, tb), lambda i: (0, i)),             # pipelined x tile
            resident(w1), resident(b1),
            resident(w2), resident(b2),
            resident(w3), resident(b3),
        ],
        out_specs=pl.BlockSpec((6, tb), lambda i: (0, i)),       # lane-dense stores
        compiler_params=pltpu.CompilerParams(
            dimension_semantics=("parallel",),                   # megacore on v7x
            vmem_limit_bytes=vmem_limit),
    )(x_t, w1, b1, w2, b2, w3, b3)


def autoenc_forward(x, params, *, block_b=None, use_bf16=True, out_dtype=None):
    """PyTorch-layout entry point: x (B, 9) -> (B, 6).

    Note: adds one XLA transpose pass on each side of the kernel; bandwidth-
    critical callers should use autoenc_forward_fm (feature-major) directly.
    """
    out_t = autoenc_forward_fm(jnp.transpose(x), params, block_b=block_b,
                               use_bf16=use_bf16, out_dtype=out_dtype)
    return jnp.transpose(out_t)


def init_params(key):
    """Deterministic init mimicking nn.Linear's U(-1/sqrt(fan_in), 1/sqrt(fan_in))."""
    dims = [(9, 5), (5, 5), (5, 6)]
    params = {}
    for i, (fan_in, fan_out) in enumerate(dims, start=1):
        key, kw, kb = jax.random.split(key, 3)
        bound = 1.0 / (fan_in ** 0.5)
        params[f"w{i}"] = jax.random.uniform(
            kw, (fan_out, fan_in), jnp.float32, -bound, bound)   # PyTorch (out, in)
        params[f"b{i}"] = jax.random.uniform(
            kb, (fan_out,), jnp.float32, -bound, bound)
    return params


def reference_forward(x, p, *, use_bf16=False):
    # Mirrors the kernel's math: optional bf16 quantization of matmul inputs,
    # f32 accumulation, f32 bias/ReLU.
    if use_bf16:
        q = lambda a: a.astype(jnp.bfloat16).astype(jnp.float32)
    else:
        q = lambda a: a
    h1 = jnp.maximum(q(x) @ q(p["w1"]).T + p["b1"], 0.0)
    h2 = jnp.maximum(q(h1) @ q(p["w2"]).T + p["b2"], 0.0)
    return q(h2) @ q(p["w3"]).T + p["b3"]


if __name__ == "__main__":
    key = jax.random.PRNGKey(0)
    key, kx1, kx2, kx3 = jax.random.split(key, 4)
    params = init_params(key)

    cases = (
        (8,    kx1, None),   # tiny batch: single ragged block, default tile
        (300,  kx2, 128),    # 3 grid steps + ragged tail; resident weights reused
        (1024, kx3, 256),    # multi-step, exactly divisible
    )
    for B, kx, block_b in cases:
        x = jax.random.normal(kx, (B, 9), jnp.float32)

        out_f32 = jax.block_until_ready(
            autoenc_forward(x, params, block_b=block_b, use_bf16=False))
        ref_f32 = reference_forward(x, params, use_bf16=False)
        assert out_f32.shape == (B, 6), out_f32.shape
        assert jnp.allclose(out_f32, ref_f32, atol=1e-4, rtol=1e-4), "f32 mismatch"

        out_bf16 = jax.block_until_ready(
            autoenc_forward(x, params, block_b=block_b, use_bf16=True))
        ref_bf16 = reference_forward(x, params, use_bf16=True)
        assert out_bf16.shape == (B, 6), out_bf16.shape
        assert jnp.allclose(out_bf16, ref_bf16, atol=5e-3, rtol=5e-3), "bf16 mismatch"

    # Primary feature-major contract: no wrapper layout passes at all.
    xT = jax.random.normal(kx1, (9, 300), jnp.float32)
    outT = jax.block_until_ready(autoenc_forward_fm(xT, params, use_bf16=False))
    refT = reference_forward(xT.T, params, use_bf16=False).T
    assert outT.shape == (6, 300), outT.shape
    assert jnp.allclose(outT, refT, atol=1e-4, rtol=1e-4), "feature-major mismatch"

    print("KERNEL_OK")
</pallas_src>

<mosaic_0001>
module attributes {stable_mosaic.version = 11 : i64} {
  func.func @autoenc_kernel(%arg0: i32, %arg1: memref<9x128xf32, #tpu.memory_space<vmem>>, %arg2: memref<5x9xf32, #tpu.memory_space<vmem>>, %arg3: memref<5x1xf32, #tpu.memory_space<vmem>>, %arg4: memref<5x5xf32, #tpu.memory_space<vmem>>, %arg5: memref<5x1xf32, #tpu.memory_space<vmem>>, %arg6: memref<6x5xf32, #tpu.memory_space<vmem>>, %arg7: memref<6x1xf32, #tpu.memory_space<vmem>>, %arg8: memref<6x128xf32, #tpu.memory_space<vmem>>) attributes {dimension_semantics = [#tpu.dimension_semantics<parallel>], iteration_bounds = array<i64: 1>, scalar_prefetch = 0 : i64, scratch_operands = 0 : i64, tpu.core_type = #tpu.core_type<tc>, window_params = [{transform_indices = @transform_0, window_bounds = array<i64: 9, 128>}, {pipeline_mode = #tpu.pipeline_mode<synchronous>, transform_indices = @transform_1, window_bounds = array<i64: 5, 9>}, {pipeline_mode = #tpu.pipeline_mode<synchronous>, transform_indices = @transform_2, window_bounds = array<i64: 5, 1>}, {pipeline_mode = #tpu.pipeline_mode<synchronous>, transform_indices = @transform_3, window_bounds = array<i64: 5, 5>}, {pipeline_mode = #tpu.pipeline_mode<synchronous>, transform_indices = @transform_4, window_bounds = array<i64: 5, 1>}, {pipeline_mode = #tpu.pipeline_mode<synchronous>, transform_indices = @transform_5, window_bounds = array<i64: 6, 5>}, {pipeline_mode = #tpu.pipeline_mode<synchronous>, transform_indices = @transform_6, window_bounds = array<i64: 6, 1>}, {transform_indices = @transform_7, window_bounds = array<i64: 6, 128>}]} {
    %c0 = arith.constant 0 : index
    %c0_0 = arith.constant 0 : index
    %0 = vector.load %arg1[%c0, %c0_0] : memref<9x128xf32, #tpu.memory_space<vmem>>, vector<9x128xf32>
    %c0_1 = arith.constant 0 : index
    %c0_2 = arith.constant 0 : index
    %1 = vector.load %arg2[%c0_1, %c0_2] : memref<5x9xf32, #tpu.memory_space<vmem>>, vector<5x9xf32>
    %cst = arith.constant dense<0.000000e+00> : vector<5x128xf32>
    %2 = tpu.matmul %1, %0, %cst {dimension_numbers = #tpu.dot_dimension_numbers<[1], [0], [0], [1], [0, 0, 1, 1], [], []>} : vector<5x9xf32>, vector<9x128xf32>, vector<5x128xf32> -> vector<5x128xf32>
    %c0_3 = arith.constant 0 : index
    %c0_4 = arith.constant 0 : index
    %3 = vector.load %arg3[%c0_3, %c0_4] : memref<5x1xf32, #tpu.memory_space<vmem>>, vector<5x1xf32>
    %4 = vector.broadcast %3 : vector<5x1xf32> to vector<5x128xf32>
    %5 = arith.addf %2, %4 : vector<5x128xf32>
    %cst_5 = arith.constant 0.000000e+00 : f32
    %6 = vector.broadcast %cst_5 : f32 to vector<5x128xf32>
    %7 = arith.maximumf %5, %6 : vector<5x128xf32>
    %c0_6 = arith.constant 0 : index
    %c0_7 = arith.constant 0 : index
    %8 = vector.load %arg4[%c0_6, %c0_7] : memref<5x5xf32, #tpu.memory_space<vmem>>, vector<5x5xf32>
    %cst_8 = arith.constant dense<0.000000e+00> : vector<5x128xf32>
    %9 = tpu.matmul %8, %7, %cst_8 {dimension_numbers = #tpu.dot_dimension_numbers<[1], [0], [0], [1], [0, 0, 1, 1], [], []>} : vector<5x5xf32>, vector<5x128xf32>, vector<5x128xf32> -> vector<5x128xf32>
    %c0_9 = arith.constant 0 : index
    %c0_10 = arith.constant 0 : index
    %10 = vector.load %arg5[%c0_9, %c0_10] : memref<5x1xf32, #tpu.memory_space<vmem>>, vector<5x1xf32>
    %11 = vector.broadcast %10 : vector<5x1xf32> to vector<5x128xf32>
    %12 = arith.addf %9, %11 : vector<5x128xf32>
    %cst_11 = arith.constant 0.000000e+00 : f32
    %13 = vector.broadcast %cst_11 : f32 to vector<5x128xf32>
    %14 = arith.maximumf %12, %13 : vector<5x128xf32>
    %c0_12 = arith.constant 0 : index
    %c0_13 = arith.constant 0 : index
    %15 = vector.load %arg6[%c0_12, %c0_13] : memref<6x5xf32, #tpu.memory_space<vmem>>, vector<6x5xf32>
    %cst_14 = arith.constant dense<0.000000e+00> : vector<6x128xf32>
    %16 = tpu.matmul %15, %14, %cst_14 {dimension_numbers = #tpu.dot_dimension_numbers<[1], [0], [0], [1], [0, 0, 1, 1], [], []>} : vector<6x5xf32>, vector<5x128xf32>, vector<6x128xf32> -> vector<6x128xf32>
    %c0_15 = arith.constant 0 : index
    %c0_16 = arith.constant 0 : index
    %17 = vector.load %arg7[%c0_15, %c0_16] : memref<6x1xf32, #tpu.memory_space<vmem>>, vector<6x1xf32>
    %18 = vector.broadcast %17 : vector<6x1xf32> to vector<6x128xf32>
    %19 = arith.addf %16, %18 : vector<6x128xf32>
    %c0_17 = arith.constant 0 : index
    %c0_18 = arith.constant 0 : index
    %20 = vector.load %arg8[%c0_17, %c0_18] : memref<6x128xf32, #tpu.memory_space<vmem>>, vector<6x128xf32>
    tpu.vector_store %arg8[%c0_17, %c0_18], %19 {strides = array<i32>} : memref<6x128xf32, #tpu.memory_space<vmem>>, vector<6x128xf32>,
    return
  }
  func.func @transform_0(%arg0: i32) -> (i32, i32) {
    %c0_i32 = arith.constant 0 : i32
    %c0_i32_0 = arith.constant 0 : i32
    return %c0_i32, %arg0 : i32, i32
  }
  func.func @transform_1(%arg0: i32) -> (i32, i32) {
    %c0_i32 = arith.constant 0 : i32
    %c0_i32_0 = arith.constant 0 : i32
    %c0_i32_1 = arith.constant 0 : i32
    return %c0_i32, %c0_i32_0 : i32, i32
  }
  func.func @transform_2(%arg0: i32) -> (i32, i32) {
    %c0_i32 = arith.constant 0 : i32
    %c0_i32_0 = arith.constant 0 : i32
    %c0_i32_1 = arith.constant 0 : i32
    return %c0_i32, %c0_i32_0 : i32, i32
  }
  func.func @transform_3(%arg0: i32) -> (i32, i32) {
    %c0_i32 = arith.constant 0 : i32
    %c0_i32_0 = arith.constant 0 : i32
    %c0_i32_1 = arith.constant 0 : i32
    return %c0_i32, %c0_i32_0 : i32, i32
  }
  func.func @transform_4(%arg0: i32) -> (i32, i32) {
    %c0_i32 = arith.constant 0 : i32
    %c0_i32_0 = arith.constant 0 : i32
    %c0_i32_1 = arith.constant 0 : i32
    return %c0_i32, %c0_i32_0 : i32, i32
  }
  func.func @transform_5(%arg0: i32) -> (i32, i32) {
    %c0_i32 = arith.constant 0 : i32
    %c0_i32_0 = arith.constant 0 : i32
    %c0_i32_1 = arith.constant 0 : i32
    return %c0_i32, %c0_i32_0 : i32, i32
  }
  func.func @transform_6(%arg0: i32) -> (i32, i32) {
    %c0_i32 = arith.constant 0 : i32
    %c0_i32_0 = arith.constant 0 : i32
    %c0_i32_1 = arith.constant 0 : i32
    return %c0_i32, %c0_i32_0 : i32, i32
  }
  func.func @transform_7(%arg0: i32) -> (i32, i32) {
    %c0_i32 = arith.constant 0 : i32
    %c0_i32_0 = arith.constant 0 : i32
    return %c0_i32, %arg0 : i32, i32
  }
}

</mosaic_0001>

<bundles_post_ra>
// kernel: tpu_custom_call.1
= control target key start
LH: loop header
LB: loop body
LE: loop exit
PB: predicated region body
PF: predicated region fallthrough
CT: control target
= control target key end

     0   :  { %vm40_vm0 = vcmask 1040384   ;;  %v357_v1 = vmov 0.0   ;;  %vm358_vm1 = vmmov 0   ;;  %vm36_vm2 = vcmask 72704   ;;  %s433_s0 = inlined_call_operand.vmem [shape: f32[9,8], index: 0, kind: input, shape index: {}]   ;;  %s434_s1 = inlined_call_operand.vmem [shape: f32[5,9], index: 1, kind: input, shape index: {}]   ;;  %s435_s2 = inlined_call_operand.vmem [shape: f32[5,1], index: 2, kind: input, shape index: {}]   ;;  %s436_s3 = inlined_call_operand.vmem [shape: f32[5,5], index: 3, kind: input, shape index: {}]   ;;  %s437_s4 = inlined_call_operand.vmem [shape: f32[5,1], index: 4, kind: input, shape index: {}]   ;;  %s438_s5 = inlined_call_operand.vmem [shape: f32[6,5], index: 5, kind: input, shape index: {}]   ;;  %s439_s6 = inlined_call_operand.vmem [shape: f32[6,1], index: 6, kind: input, shape index: {}]   ;;  %s440_s7 = inlined_call_operand.hbm [shape: f32[6,8], index: 7, kind: output, shape index: {}]  }
   0x1   :  { %v28_v0 = vld [vmem:[%s433_s0 + $0x8] sm:$0x1]  ;;  %312 = vmatprep.subr.mxu0 %v357_v1  ;;  %v27_v2 = vld [vmem:[%s433_s0] sm:$0xff]  ;;  %316 = vmatprep.mubr.msk.f32.mxu0 %vm358_vm1, %v357_v1  ;;  %v359_v5 = vmov 0  }
   0x2   :  { %v30_v3 = vld [vmem:[%s435_s2] sm:$0x1f]  ;;  %313 = vmatpush3.msk.msra.mxu0 %vm40_vm0, %v28_v0  ;;  %333 = vset.pattern.permute.xlu0 %v359_v5 }
   0x3   :  { %v29_v4 = vld [vmem:[%s434_s1] sm:$0x1f] }
   0x4   :  { %12 = vsyncpa [#allocation3], 0  ;;  %314 = vmatprep.subr.mxu0 %v357_v1  ;;  %33 = vperm.xlu0 %333, %v30_v3   ;;  %v116_v6 = vld [vmem:[%s437_s4] sm:$0x1f]  ;;  %vm126_vm3 = vcmask 1044480   ;;  %vm122_vm4 = vcmask 39936  }
   0x5   :  { %315 = vmatpush3.msra.mxu0 %v27_v2  ;;  %319 = vmatprep.subr.mxu1 %v357_v1  ;;  %v115_v12 = vld [vmem:[%s436_s3] sm:$0x1f]  ;;  %s360_s3 = smov [#allocation2]  }
   0x6   :  { %317 = vmatmul.mubr.msk.f32.vlgmr.msra.gmra.mxu0 %vm36_vm2, %v29_v4  ;;  %321 = vmatprep.mubr.msk.f32.mxu1 %vm358_vm1, %v357_v1  ;;  %v202_v13 = vld [vmem:[%s439_s6] sm:$0x3f]  ;;  %s291_s13 = sshll.u32 %s360_s3, 4  ;;  %s292_s13 = int_to_ptr.vmem [resolvable:$true] %s291_s13 }
   0x7   :  { %334 = vset.pattern.permute.xlu1 %v359_v5  ;;  %v201_v19 = vld [vmem:[%s438_s5] sm:$0x3f]  ;;  %s335_s6 = scalar_lea.vmem %s292_s13, 128  ;;  %p340_p1 = scmp.lt.s32.totalorder %s292_s13, %s292_s13 }
   0x8   :  { %119 = vperm.xlu0 %333, %v116_v6   ;;  %205 = vperm.xlu1 %334, %v202_v13   ;;  %p336_p0 = scmp.ne.s32.totalorder %s292_s13, %s335_s6  ;;  %p341_p2 = scmp.lt.s32.totalorder %s335_s6, %s335_s6 }
   0xa   :  { %p342_p3 = por %p341_p2, %p340_p1 }
   0xc   :  { %p343_p4 = pnand %p342_p3, %p336_p0 }
  0x7f   :  { %v34_v7 = vpop.permute.xlu0 %33 }
  0x83   :  { %v120_v14 = vpop.permute.xlu0 %119  ;;  %v206_v20 = vpop.permute.xlu1 %205 }
  0xc6   :  { %v110_v8 = vpop.f32.mrf.mxu0 }
  0xc7   :  { %v111_v9 = vadd.f32 %v110_v8, %v34_v7 }
  0xc8   :  { %v318_v10 = vpop.f32.mrf.mxu0 }
  0xc9   :  { %v114_v11 = vmax.f32 %v111_v9, 0.0 }
  0xcb   :  { %320 = vmatpush3.msk.msra.mxu1 %vm126_vm3, %v114_v11 }
  0xcc   :  { %322 = vmatmul.mubr.msk.f32.vlgmr.msra.gmra.mxu1 %vm122_vm4, %v115_v12  ;;  %324 = vmatprep.subr.mxu1 %v357_v1 }
  0xcd   :  { %326 = vmatprep.mubr.msk.f32.mxu1 %vm358_vm1, %v357_v1 }
 0x18c   :  { %v196_v15 = vpop.f32.mrf.mxu1 }
 0x18d   :  { %v197_v16 = vadd.f32 %v196_v15, %v120_v14 }
 0x18e   :  { %v323_v17 = vpop.f32.mrf.mxu1 }
 0x18f   :  { %v200_v18 = vmax.f32 %v197_v16, 0.0 }
 0x191   :  { %325 = vmatpush3.msk.msra.mxu1 %vm126_vm3, %v200_v18 }
 0x192   :  { %327 = vmatmul.mubr.msk.f32.vlgmr.msra.gmra.mxu1 %vm122_vm4, %v201_v19 }
 0x252   :  { %v280_v21 = vpop.f32.mrf.mxu1 }
 0x253   :  { %v281_v22 = vadd.f32 %v280_v21, %v206_v20 }
 0x254   :  { %v328_v23 = vpop.f32.mrf.mxu1 }
 0x255   :  { %284 = vst [vmem:[#allocation2] sm:$0x3f] %v281_v22 }
 0x256   :  { %346 = shalt.err (!%p343_p4)
}
 0x257   :  { %294 = dma.vmem_to_hbm [thread:$0]  %s292_s13, 128, %s440_s7, [#allocation3]  }
 0x258   :  { %355 = dma.done.wait [#allocation3], 128  }
 0x259   :  { %356 = vsyncadd [#allocation3], 4294967168 }
 0x25a   :  { %298 = vsyncpa [#allocation3], 1 }

</bundles_post_ra>
